<compile_context>
chip_gen: v7x
topology: tpu7x:2x2x1
jax: 0.10.0
libtpu: 0.0.40
codegen_flags: <defaults>
</compile_context>

<pallas_src>
import functools

import jax
import jax.numpy as jnp
from jax import lax
from jax.experimental import pallas as pl
from jax.experimental.pallas import tpu as pltpu

_LANES = 128
_SUBLANES = 8
_MAX_TILE_ROWS = 8192          # 4 MiB per f32 input block
_INNER_ROWS = 512              # per-chunk rows inside the kernel (~256 KiB temps)
_VMEM_LIMIT_BYTES = 32 * 1024 * 1024   # safe on v5e/v6e/v7x


def _round_up(x, m):
    return ((x + m - 1) // m) * m


def _pad_value(dtype):
    # Most-negative representable value: always fails the strict `> threshold`
    # compare, so padded elements contribute nothing to any sum.
    if jnp.issubdtype(dtype, jnp.floating):
        return jnp.finfo(dtype).min
    if jnp.issubdtype(dtype, jnp.integer):
        return jnp.iinfo(dtype).min
    return False


def _metrics_kernel(scal_ref, rowinfo_ref, pred_ref, true_ref, o_ref,
                    acc_p, acc_t, acc_i, *, tile_rows, inner_rows,
                    tiles_per_split):
    c = pl.program_id(0)        # split (TensorCore) index -- "parallel"
    i = pl.program_id(1)        # reduction step within the split -- "arbitrary"

    @pl.when(i == 0)
    def _init():
        acc_p[...] = jnp.zeros_like(acc_p)
        acc_t[...] = jnp.zeros_like(acc_t)
        acc_i[...] = jnp.zeros_like(acc_i)

    thr = scal_ref[0]                     # runtime threshold (no recompile)
    n_rows = rowinfo_ref[0]               # valid rows of the (rows, 128) view
    row0 = (c * tiles_per_split + i) * tile_rows   # unclamped global first row
    row_hi = row0 + tile_rows
    n_inner = tile_rows // inner_rows
    k = inner_rows // _SUBLANES

    def accumulate(masked):
        def body(j, carry):
            off = pl.multiple_of(j * inner_rows, inner_rows)
            p = (pred_ref[pl.ds(off, inner_rows), :] > thr).astype(jnp.float32)
            t = (true_ref[pl.ds(off, inner_rows), :] > thr).astype(jnp.float32)
            if masked:
                gr = lax.broadcasted_iota(jnp.int32, (inner_rows, _LANES), 0)
                valid = (gr + (row0 + off)) < n_rows
                zero = jnp.float32(0.0)
                p = jnp.where(valid, p, zero)
                t = jnp.where(valid, t, zero)
            inter = p * t
            # Per-(sublane,lane) VALU-only accumulation; the single cross-lane
            # reduce happens later (in the wrapper) on tiny partial sums.
            acc_p[...] += p.reshape(k, _SUBLANES, _LANES).sum(axis=0)
            acc_t[...] += t.reshape(k, _SUBLANES, _LANES).sum(axis=0)
            acc_i[...] += inter.reshape(k, _SUBLANES, _LANES).sum(axis=0)
            return carry
        lax.fori_loop(0, n_inner, body, 0)

    # Fast path for fully in-bounds blocks (no per-element mask cost).
    @pl.when(row_hi <= n_rows)
    def _full():
        accumulate(False)

    # Masked path only for the single boundary block.
    @pl.when(jnp.logical_and(row0 < n_rows, row_hi > n_rows))
    def _partial():
        accumulate(True)
    # Blocks entirely past the valid rows (clamped duplicates) are skipped.

    @pl.when(i == tiles_per_split - 1)
    def _finalize():
        o_ref[0, 0, :, :] = acc_p[...]
        o_ref[0, 1, :, :] = acc_t[...]
        o_ref[0, 2, :, :] = acc_i[...]


@jax.jit
def _metrics_impl(pred, true, threshold):
    assert pred.shape == true.shape
    n = int(pred.size)
    flat_p = pred.reshape(-1)
    flat_t = true.reshape(-1)

    rows = pl.cdiv(n, _LANES)
    rem = n % _LANES
    if rem:
        # Only when the element count is not lane-aligned: pad just the final
        # partial 128-lane row.  (Fully copy-free handling of this case would
        # need 1-D manual DMA; kept simple for robustness.)
        pad = _LANES - rem
        flat_p = jnp.pad(flat_p, (0, pad), constant_values=_pad_value(flat_p.dtype))
        flat_t = jnp.pad(flat_t, (0, pad), constant_values=_pad_value(flat_t.dtype))
    p2 = flat_p.reshape(rows, _LANES)   # free view when n % 128 == 0
    t2 = flat_t.reshape(rows, _LANES)

    # Tile selection: biggest block that keeps double-buffered VMEM modest.
    if rows >= _MAX_TILE_ROWS:
        tile_rows = _MAX_TILE_ROWS
    elif rows > _INNER_ROWS:
        tile_rows = _round_up(rows, _INNER_ROWS)
    else:
        tile_rows = _round_up(rows, _SUBLANES)
    inner_rows = min(_INNER_ROWS, tile_rows)
    num_tiles = pl.cdiv(rows, tile_rows)
    num_splits = 2 if num_tiles >= 2 else 1      # use both TCs on v7x
    tiles_per_split = pl.cdiv(num_tiles, num_splits)

    scal = jnp.asarray(threshold, dtype=jnp.float32).reshape(1)
    rowinfo = jnp.array([rows, num_tiles - 1], dtype=jnp.int32)

    kernel = functools.partial(
        _metrics_kernel,
        tile_rows=tile_rows,
        inner_rows=inner_rows,
        tiles_per_split=tiles_per_split,
    )

    def in_map(c, i, scal_ref, rowinfo_ref):
        # Clamp so over-provisioned grid steps never index past the array; a
        # clamped step repeats the previous window (DMA elided) and is fully
        # masked / skipped inside the kernel.
        return (jnp.minimum(c * tiles_per_split + i, rowinfo_ref[1]), 0)

    def out_map(c, i, scal_ref, rowinfo_ref):
        return (c, 0, 0, 0)

    itemsize = jnp.dtype(p2.dtype).itemsize
    partials = pl.pallas_call(
        kernel,
        out_shape=jax.ShapeDtypeStruct(
            (num_splits, 3, _SUBLANES, _LANES), jnp.float32),
        grid_spec=pltpu.PrefetchScalarGridSpec(
            num_scalar_prefetch=2,
            grid=(num_splits, tiles_per_split),
            in_specs=[
                pl.BlockSpec((tile_rows, _LANES), in_map),
                pl.BlockSpec((tile_rows, _LANES), in_map),
            ],
            out_specs=pl.BlockSpec((1, 3, _SUBLANES, _LANES), out_map),
            scratch_shapes=[pltpu.VMEM((_SUBLANES, _LANES), jnp.float32)] * 3,
        ),
        compiler_params=pltpu.CompilerParams(
            dimension_semantics=("parallel", "arbitrary"),
            vmem_limit_bytes=_VMEM_LIMIT_BYTES,
        ),
        cost_estimate=pl.CostEstimate(
            flops=8 * n, transcendentals=0, bytes_accessed=2 * n * itemsize),
    )(scal, rowinfo, p2, t2)

    # Tiny combine of the per-split per-lane partial sums + final metric math.
    sums = jnp.sum(partials, axis=(0, 2, 3))
    s_pred = sums[0]
    s_true = sums[1]
    s_inter = sums[2]
    s_union = s_pred + s_true - s_inter   # inclusion-exclusion on {0,1} masks

    eps = 1e-10
    inv_n = jnp.float32(1.0 / n)
    m_inter = s_inter * inv_n
    nonzero = m_inter >= eps              # torch: mean(intersection) < eps -> zeros
    zero = jnp.float32(0.0)
    iou = jnp.where(nonzero, m_inter / (s_union * inv_n), zero)
    precision = jnp.where(nonzero, m_inter / (s_pred * inv_n), zero)
    recall = jnp.where(nonzero, m_inter / (s_true * inv_n), zero)
    f1 = jnp.where(nonzero,
                   2.0 * precision * recall / (precision + recall), zero)
    return jnp.stack([precision, recall, f1, iou])


def metrics(pred, true, threshold=0.5):
    return _metrics_impl(pred, true, jnp.float32(threshold))


def _metrics_ref(pred, true, threshold=0.5):
    eps = 1e-10
    pred_ = (pred > threshold).astype(jnp.float32)
    true_ = (true > threshold).astype(jnp.float32)
    intersection = jnp.clip(pred_ * true_, 0.0, 1.0)
    union = jnp.clip(pred_ + true_, 0.0, 1.0)
    m_inter = jnp.mean(intersection)
    iou = m_inter / jnp.mean(union)
    precision = m_inter / jnp.mean(pred_)
    recall = m_inter / jnp.mean(true_)
    f1 = 2 * precision * recall / (precision + recall)
    res = jnp.stack([precision, recall, f1, iou])
    return jnp.where(m_inter < eps, jnp.zeros(4, jnp.float32), res)


if __name__ == "__main__":
    key = jax.random.PRNGKey(0)
    k1, k2 = jax.random.split(key)

    # Small NCHW-style inputs, as the module would see (segmentation probs).
    pred = jax.random.uniform(k1, (2, 4, 16, 16), dtype=jnp.float32)
    true = jax.random.uniform(k2, (2, 4, 16, 16), dtype=jnp.float32)

    out = jax.block_until_ready(metrics(pred, true, threshold=0.5))
    ref = _metrics_ref(pred, true, threshold=0.5)
    assert out.shape == (4,)
    assert jnp.allclose(out, ref, atol=1e-5, rtol=1e-5), (out, ref)

    # Empty intersection -> all-zeros path.
    zeros_out = jax.block_until_ready(
        metrics(jnp.zeros((2, 4, 16, 16), jnp.float32), true, threshold=0.5))
    assert jnp.allclose(zeros_out, jnp.zeros(4)), zeros_out

    # Larger, lane-unaligned shape: exercises multi-tile reduction, the
    # dual-core split, the masked boundary block, the clamped duplicate block
    # and the partial-row pad.
    big_p = jax.random.uniform(k1, (5, 3, 700, 257), dtype=jnp.float32)
    big_t = jax.random.uniform(k2, (5, 3, 700, 257), dtype=jnp.float32)
    big_out = jax.block_until_ready(metrics(big_p, big_t, threshold=0.5))
    big_ref = _metrics_ref(big_p, big_t, threshold=0.5)
    assert jnp.allclose(big_out, big_ref, atol=1e-5, rtol=1e-5), (big_out, big_ref)

    # Lane-aligned multi-tile shape: no padding copy, pure fast path across
    # both splits.
    al_p = jax.random.uniform(k1, (4, 4, 512, 256), dtype=jnp.float32)
    al_t = jax.random.uniform(k2, (4, 4, 512, 256), dtype=jnp.float32)
    al_out = jax.block_until_ready(metrics(al_p, al_t, threshold=0.5))
    al_ref = _metrics_ref(al_p, al_t, threshold=0.5)
    assert jnp.allclose(al_out, al_ref, atol=1e-5, rtol=1e-5), (al_out, al_ref)

    print("KERNEL_OK")
</pallas_src>

<mosaic_0001>
module attributes {stable_mosaic.version = 11 : i64} {
  func.func @_metrics_kernel(%arg0: i32, %arg1: i32, %arg2: memref<1xf32, #tpu.memory_space<smem>>, %arg3: memref<2xi32, #tpu.memory_space<smem>>, %arg4: memref<16x128xf32, #tpu.memory_space<vmem>>, %arg5: memref<16x128xf32, #tpu.memory_space<vmem>>, %arg6: memref<1x3x8x128xf32, #tpu.memory_space<vmem>>, %arg7: memref<8x128xf32, #tpu.memory_space<vmem>>, %arg8: memref<8x128xf32, #tpu.memory_space<vmem>>, %arg9: memref<8x128xf32, #tpu.memory_space<vmem>>) attributes {dimension_semantics = [#tpu.dimension_semantics<parallel>, #tpu.dimension_semantics<arbitrary>], iteration_bounds = array<i64: 1, 1>, scalar_prefetch = 2 : i64, scratch_operands = 3 : i64, tpu.core_type = #tpu.core_type<tc>, window_params = [{transform_indices = @transform_0, window_bounds = array<i64: 16, 128>}, {transform_indices = @transform_1, window_bounds = array<i64: 16, 128>}, {transform_indices = @transform_2, window_bounds = array<i64: 1, 3, 8, 128>}]} {
    %c0_i32 = arith.constant 0 : i32
    %0 = arith.cmpi eq, %arg1, %c0_i32 : i32
    %1 = arith.extui %0 : i1 to i32
    %c0_i32_0 = arith.constant 0 : i32
    %2 = arith.cmpi ne, %1, %c0_i32_0 : i32
    scf.if %2 {
      %cst = arith.constant 0.000000e+00 : f32
      %20 = vector.broadcast %cst : f32 to vector<8x128xf32>
      %c0_7 = arith.constant 0 : index
      %c0_8 = arith.constant 0 : index
      %21 = vector.load %arg7[%c0_7, %c0_8] : memref<8x128xf32, #tpu.memory_space<vmem>>, vector<8x128xf32>
      tpu.vector_store %arg7[%c0_7, %c0_8], %20 {strides = array<i32>} : memref<8x128xf32, #tpu.memory_space<vmem>>, vector<8x128xf32>,
      %cst_9 = arith.constant 0.000000e+00 : f32
      %22 = vector.broadcast %cst_9 : f32 to vector<8x128xf32>
      %c0_10 = arith.constant 0 : index
      %c0_11 = arith.constant 0 : index
      %23 = vector.load %arg8[%c0_10, %c0_11] : memref<8x128xf32, #tpu.memory_space<vmem>>, vector<8x128xf32>
      tpu.vector_store %arg8[%c0_10, %c0_11], %22 {strides = array<i32>} : memref<8x128xf32, #tpu.memory_space<vmem>>, vector<8x128xf32>,
      %cst_12 = arith.constant 0.000000e+00 : f32
      %24 = vector.broadcast %cst_12 : f32 to vector<8x128xf32>
      %c0_13 = arith.constant 0 : index
      %c0_14 = arith.constant 0 : index
      %25 = vector.load %arg9[%c0_13, %c0_14] : memref<8x128xf32, #tpu.memory_space<vmem>>, vector<8x128xf32>
      tpu.vector_store %arg9[%c0_13, %c0_14], %24 {strides = array<i32>} : memref<8x128xf32, #tpu.memory_space<vmem>>, vector<8x128xf32>,
    } else {
    }
    %c0 = arith.constant 0 : index
    %3 = memref.load %arg2[%c0] : memref<1xf32, #tpu.memory_space<smem>>
    %c0_1 = arith.constant 0 : index
    %4 = memref.load %arg3[%c0_1] : memref<2xi32, #tpu.memory_space<smem>>
    %c1_i32 = arith.constant 1 : i32
    %5 = arith.muli %arg0, %c1_i32 : i32
    %6 = arith.addi %5, %arg1 : i32
    %c16_i32 = arith.constant 16 : i32
    %7 = arith.muli %6, %c16_i32 : i32
    %c16_i32_2 = arith.constant 16 : i32
    %8 = arith.addi %7, %c16_i32_2 : i32
    %9 = arith.cmpi sle, %8, %4 : i32
    %10 = arith.extui %9 : i1 to i32
    %c0_i32_3 = arith.constant 0 : i32
    %11 = arith.cmpi ne, %10, %c0_i32_3 : i32
    scf.if %11 {
      %c0_i32_7 = arith.constant 0 : i32
      %c16_i32_8 = arith.constant 16 : i32
      %20 = arith.muli %c0_i32_7, %c16_i32_8 : i32
      %21 = tpu.assume_multiple %20, 16 : i32
      %22 = arith.index_cast %21 : i32 to index
      %c0_9 = arith.constant 0 : index
      %23 = vector.load %arg4[%22, %c0_9] : memref<16x128xf32, #tpu.memory_space<vmem>>, vector<16x128xf32>
      %24 = vector.broadcast %3 : f32 to vector<16x128xf32>
      %25 = arith.cmpf ogt, %23, %24 : vector<16x128xf32>
      %26 = arith.extui %25 : vector<16x128xi1> to vector<16x128xi32>
      %27 = arith.sitofp %26 : vector<16x128xi32> to vector<16x128xf32>
      %28 = arith.index_cast %21 : i32 to index
      %c0_10 = arith.constant 0 : index
      %29 = vector.load %arg5[%28, %c0_10] : memref<16x128xf32, #tpu.memory_space<vmem>>, vector<16x128xf32>
      %30 = vector.broadcast %3 : f32 to vector<16x128xf32>
      %31 = arith.cmpf ogt, %29, %30 : vector<16x128xf32>
      %32 = arith.extui %31 : vector<16x128xi1> to vector<16x128xi32>
      %33 = arith.sitofp %32 : vector<16x128xi32> to vector<16x128xf32>
      %34 = arith.mulf %27, %33 : vector<16x128xf32>
      %c0_11 = arith.constant 0 : index
      %c0_12 = arith.constant 0 : index
      %35 = vector.load %arg7[%c0_11, %c0_12] : memref<8x128xf32, #tpu.memory_space<vmem>>, vector<8x128xf32>
      %36 = vector.shape_cast %27 : vector<16x128xf32> to vector<2x8x128xf32>
      %cst = arith.constant dense<0.000000e+00> : vector<8x128xf32>
      %37 = vector.multi_reduction <add>, %36, %cst [0] : vector<2x8x128xf32> to vector<8x128xf32>
      %38 = arith.addf %35, %37 : vector<8x128xf32>
      %c0_13 = arith.constant 0 : index
      %c0_14 = arith.constant 0 : index
      %39 = vector.load %arg7[%c0_13, %c0_14] : memref<8x128xf32, #tpu.memory_space<vmem>>, vector<8x128xf32>
      tpu.vector_store %arg7[%c0_13, %c0_14], %38 {strides = array<i32>} : memref<8x128xf32, #tpu.memory_space<vmem>>, vector<8x128xf32>,
      %c0_15 = arith.constant 0 : index
      %c0_16 = arith.constant 0 : index
      %40 = vector.load %arg8[%c0_15, %c0_16] : memref<8x128xf32, #tpu.memory_space<vmem>>, vector<8x128xf32>
      %41 = vector.shape_cast %33 : vector<16x128xf32> to vector<2x8x128xf32>
      %cst_17 = arith.constant dense<0.000000e+00> : vector<8x128xf32>
      %42 = vector.multi_reduction <add>, %41, %cst_17 [0] : vector<2x8x128xf32> to vector<8x128xf32>
      %43 = arith.addf %40, %42 : vector<8x128xf32>
      %c0_18 = arith.constant 0 : index
      %c0_19 = arith.constant 0 : index
      %44 = vector.load %arg8[%c0_18, %c0_19] : memref<8x128xf32, #tpu.memory_space<vmem>>, vector<8x128xf32>
      tpu.vector_store %arg8[%c0_18, %c0_19], %43 {strides = array<i32>} : memref<8x128xf32, #tpu.memory_space<vmem>>, vector<8x128xf32>,
      %c0_20 = arith.constant 0 : index
      %c0_21 = arith.constant 0 : index
      %45 = vector.load %arg9[%c0_20, %c0_21] : memref<8x128xf32, #tpu.memory_space<vmem>>, vector<8x128xf32>
      %46 = vector.shape_cast %34 : vector<16x128xf32> to vector<2x8x128xf32>
      %cst_22 = arith.constant dense<0.000000e+00> : vector<8x128xf32>
      %47 = vector.multi_reduction <add>, %46, %cst_22 [0] : vector<2x8x128xf32> to vector<8x128xf32>
      %48 = arith.addf %45, %47 : vector<8x128xf32>
      %c0_23 = arith.constant 0 : index
      %c0_24 = arith.constant 0 : index
      %49 = vector.load %arg9[%c0_23, %c0_24] : memref<8x128xf32, #tpu.memory_space<vmem>>, vector<8x128xf32>
      tpu.vector_store %arg9[%c0_23, %c0_24], %48 {strides = array<i32>} : memref<8x128xf32, #tpu.memory_space<vmem>>, vector<8x128xf32>,
      %c1_i32_25 = arith.constant 1 : i32
    } else {
    }
    %12 = arith.cmpi slt, %7, %4 : i32
    %13 = arith.cmpi sgt, %8, %4 : i32
    %14 = arith.andi %12, %13 : i1
    %15 = arith.extui %14 : i1 to i32
    %c0_i32_4 = arith.constant 0 : i32
    %16 = arith.cmpi ne, %15, %c0_i32_4 : i32
    scf.if %16 {
      %c0_i32_7 = arith.constant 0 : i32
      %c16_i32_8 = arith.constant 16 : i32
      %20 = arith.muli %c0_i32_7, %c16_i32_8 : i32
      %21 = tpu.assume_multiple %20, 16 : i32
      %22 = arith.index_cast %21 : i32 to index
      %c0_9 = arith.constant 0 : index
      %23 = vector.load %arg4[%22, %c0_9] : memref<16x128xf32, #tpu.memory_space<vmem>>, vector<16x128xf32>
      %24 = vector.broadcast %3 : f32 to vector<16x128xf32>
      %25 = arith.cmpf ogt, %23, %24 : vector<16x128xf32>
      %26 = arith.extui %25 : vector<16x128xi1> to vector<16x128xi32>
      %27 = arith.sitofp %26 : vector<16x128xi32> to vector<16x128xf32>
      %28 = arith.index_cast %21 : i32 to index
      %c0_10 = arith.constant 0 : index
      %29 = vector.load %arg5[%28, %c0_10] : memref<16x128xf32, #tpu.memory_space<vmem>>, vector<16x128xf32>
      %30 = vector.broadcast %3 : f32 to vector<16x128xf32>
      %31 = arith.cmpf ogt, %29, %30 : vector<16x128xf32>
      %32 = arith.extui %31 : vector<16x128xi1> to vector<16x128xi32>
      %33 = arith.sitofp %32 : vector<16x128xi32> to vector<16x128xf32>
      %34 = tpu.iota {dimensions = array<i32: 0>} : vector<16x128xi32>
      %35 = arith.addi %7, %21 : i32
      %36 = vector.broadcast %35 : i32 to vector<16x128xi32>
      %37 = arith.addi %34, %36 : vector<16x128xi32>
      %38 = vector.broadcast %4 : i32 to vector<16x128xi32>
      %39 = arith.cmpi slt, %37, %38 : vector<16x128xi32>
      %cst = arith.constant 0.000000e+00 : f32
      %40 = vector.broadcast %cst : f32 to vector<16x128xf32>
      %41 = arith.select %39, %27, %40 : vector<16x128xi1>, vector<16x128xf32>
      %cst_11 = arith.constant 0.000000e+00 : f32
      %42 = vector.broadcast %cst_11 : f32 to vector<16x128xf32>
      %43 = arith.select %39, %33, %42 : vector<16x128xi1>, vector<16x128xf32>
      %44 = arith.mulf %41, %43 : vector<16x128xf32>
      %c0_12 = arith.constant 0 : index
      %c0_13 = arith.constant 0 : index
      %45 = vector.load %arg7[%c0_12, %c0_13] : memref<8x128xf32, #tpu.memory_space<vmem>>, vector<8x128xf32>
      %46 = vector.shape_cast %41 : vector<16x128xf32> to vector<2x8x128xf32>
      %cst_14 = arith.constant dense<0.000000e+00> : vector<8x128xf32>
      %47 = vector.multi_reduction <add>, %46, %cst_14 [0] : vector<2x8x128xf32> to vector<8x128xf32>
      %48 = arith.addf %45, %47 : vector<8x128xf32>
      %c0_15 = arith.constant 0 : index
      %c0_16 = arith.constant 0 : index
      %49 = vector.load %arg7[%c0_15, %c0_16] : memref<8x128xf32, #tpu.memory_space<vmem>>, vector<8x128xf32>
      tpu.vector_store %arg7[%c0_15, %c0_16], %48 {strides = array<i32>} : memref<8x128xf32, #tpu.memory_space<vmem>>, vector<8x128xf32>,
      %c0_17 = arith.constant 0 : index
      %c0_18 = arith.constant 0 : index
      %50 = vector.load %arg8[%c0_17, %c0_18] : memref<8x128xf32, #tpu.memory_space<vmem>>, vector<8x128xf32>
      %51 = vector.shape_cast %43 : vector<16x128xf32> to vector<2x8x128xf32>
      %cst_19 = arith.constant dense<0.000000e+00> : vector<8x128xf32>
      %52 = vector.multi_reduction <add>, %51, %cst_19 [0] : vector<2x8x128xf32> to vector<8x128xf32>
      %53 = arith.addf %50, %52 : vector<8x128xf32>
      %c0_20 = arith.constant 0 : index
      %c0_21 = arith.constant 0 : index
      %54 = vector.load %arg8[%c0_20, %c0_21] : memref<8x128xf32, #tpu.memory_space<vmem>>, vector<8x128xf32>
      tpu.vector_store %arg8[%c0_20, %c0_21], %53 {strides = array<i32>} : memref<8x128xf32, #tpu.memory_space<vmem>>, vector<8x128xf32>,
      %c0_22 = arith.constant 0 : index
      %c0_23 = arith.constant 0 : index
      %55 = vector.load %arg9[%c0_22, %c0_23] : memref<8x128xf32, #tpu.memory_space<vmem>>, vector<8x128xf32>
      %56 = vector.shape_cast %44 : vector<16x128xf32> to vector<2x8x128xf32>
      %cst_24 = arith.constant dense<0.000000e+00> : vector<8x128xf32>
      %57 = vector.multi_reduction <add>, %56, %cst_24 [0] : vector<2x8x128xf32> to vector<8x128xf32>
      %58 = arith.addf %55, %57 : vector<8x128xf32>
      %c0_25 = arith.constant 0 : index
      %c0_26 = arith.constant 0 : index
      %59 = vector.load %arg9[%c0_25, %c0_26] : memref<8x128xf32, #tpu.memory_space<vmem>>, vector<8x128xf32>
      tpu.vector_store %arg9[%c0_25, %c0_26], %58 {strides = array<i32>} : memref<8x128xf32, #tpu.memory_space<vmem>>, vector<8x128xf32>,
      %c1_i32_27 = arith.constant 1 : i32
    } else {
    }
    %c0_i32_5 = arith.constant 0 : i32
    %17 = arith.cmpi eq, %arg1, %c0_i32_5 : i32
    %18 = arith.extui %17 : i1 to i32
    %c0_i32_6 = arith.constant 0 : i32
    %19 = arith.cmpi ne, %18, %c0_i32_6 : i32
    scf.if %19 {
      %c0_7 = arith.constant 0 : index
      %c0_8 = arith.constant 0 : index
      %20 = vector.load %arg7[%c0_7, %c0_8] : memref<8x128xf32, #tpu.memory_space<vmem>>, vector<8x128xf32>
      %c0_9 = arith.constant 0 : index
      %c0_10 = arith.constant 0 : index
      %c0_11 = arith.constant 0 : index
      %c0_12 = arith.constant 0 : index
      %21 = vector.load %arg6[%c0_9, %c0_10, %c0_11, %c0_12] : memref<1x3x8x128xf32, #tpu.memory_space<vmem>>, vector<1x1x8x128xf32>
      %22 = vector.shape_cast %21 : vector<1x1x8x128xf32> to vector<8x128xf32>
      %23 = vector.shape_cast %20 : vector<8x128xf32> to vector<1x1x8x128xf32>
      tpu.vector_store %arg6[%c0_9, %c0_10, %c0_11, %c0_12], %23 {strides = array<i32>} : memref<1x3x8x128xf32, #tpu.memory_space<vmem>>, vector<1x1x8x128xf32>,
      %c0_13 = arith.constant 0 : index
      %c0_14 = arith.constant 0 : index
      %24 = vector.load %arg8[%c0_13, %c0_14] : memref<8x128xf32, #tpu.memory_space<vmem>>, vector<8x128xf32>
      %c0_15 = arith.constant 0 : index
      %c1 = arith.constant 1 : index
      %c0_16 = arith.constant 0 : index
      %c0_17 = arith.constant 0 : index
      %25 = vector.load %arg6[%c0_15, %c1, %c0_16, %c0_17] : memref<1x3x8x128xf32, #tpu.memory_space<vmem>>, vector<1x1x8x128xf32>
      %26 = vector.shape_cast %25 : vector<1x1x8x128xf32> to vector<8x128xf32>
      %27 = vector.shape_cast %24 : vector<8x128xf32> to vector<1x1x8x128xf32>
      tpu.vector_store %arg6[%c0_15, %c1, %c0_16, %c0_17], %27 {strides = array<i32>} : memref<1x3x8x128xf32, #tpu.memory_space<vmem>>, vector<1x1x8x128xf32>,
      %c0_18 = arith.constant 0 : index
      %c0_19 = arith.constant 0 : index
      %28 = vector.load %arg9[%c0_18, %c0_19] : memref<8x128xf32, #tpu.memory_space<vmem>>, vector<8x128xf32>
      %c0_20 = arith.constant 0 : index
      %c2 = arith.constant 2 : index
      %c0_21 = arith.constant 0 : index
      %c0_22 = arith.constant 0 : index
      %29 = vector.load %arg6[%c0_20, %c2, %c0_21, %c0_22] : memref<1x3x8x128xf32, #tpu.memory_space<vmem>>, vector<1x1x8x128xf32>
      %30 = vector.shape_cast %29 : vector<1x1x8x128xf32> to vector<8x128xf32>
      %31 = vector.shape_cast %28 : vector<8x128xf32> to vector<1x1x8x128xf32>
      tpu.vector_store %arg6[%c0_20, %c2, %c0_21, %c0_22], %31 {strides = array<i32>} : memref<1x3x8x128xf32, #tpu.memory_space<vmem>>, vector<1x1x8x128xf32>,
    } else {
    }
    return
  }
  func.func @transform_0(%arg0: i32, %arg1: i32, %arg2: memref<1xf32, #tpu.memory_space<smem>>, %arg3: memref<2xi32, #tpu.memory_space<smem>>) -> (i32, i32) {
    %c1_i32 = arith.constant 1 : i32
    %0 = arith.muli %arg0, %c1_i32 : i32
    %1 = arith.addi %0, %arg1 : i32
    %c1 = arith.constant 1 : index
    %2 = memref.load %arg3[%c1] : memref<2xi32, #tpu.memory_space<smem>>
    %3 = arith.minsi %1, %2 : i32
    %c0_i32 = arith.constant 0 : i32
    %c0_i32_0 = arith.constant 0 : i32
    return %3, %c0_i32 : i32, i32
  }
  func.func @transform_1(%arg0: i32, %arg1: i32, %arg2: memref<1xf32, #tpu.memory_space<smem>>, %arg3: memref<2xi32, #tpu.memory_space<smem>>) -> (i32, i32) {
    %c1_i32 = arith.constant 1 : i32
    %0 = arith.muli %arg0, %c1_i32 : i32
    %1 = arith.addi %0, %arg1 : i32
    %c1 = arith.constant 1 : index
    %2 = memref.load %arg3[%c1] : memref<2xi32, #tpu.memory_space<smem>>
    %3 = arith.minsi %1, %2 : i32
    %c0_i32 = arith.constant 0 : i32
    %c0_i32_0 = arith.constant 0 : i32
    return %3, %c0_i32 : i32, i32
  }
  func.func @transform_2(%arg0: i32, %arg1: i32, %arg2: memref<1xf32, #tpu.memory_space<smem>>, %arg3: memref<2xi32, #tpu.memory_space<smem>>) -> (i32, i32, i32, i32) {
    %c0_i32 = arith.constant 0 : i32
    %c0_i32_0 = arith.constant 0 : i32
    %c0_i32_1 = arith.constant 0 : i32
    %c0_i32_2 = arith.constant 0 : i32
    return %arg0, %c0_i32, %c0_i32_0, %c0_i32_1 : i32, i32, i32, i32
  }
}

</mosaic_0001>

<bundles_post_ra>
// kernel: _metrics_impl.1
= control target key start
LH: loop header
LB: loop body
LE: loop exit
PB: predicated region body
PF: predicated region fallthrough
CT: control target
= control target key end

     0   :  { %s333_s0 = inlined_call_operand.<no memory space> [shape: f32[1], index: 0, kind: input, shape index: {}]   ;;  %s334_s1 = inlined_call_operand.vmem [shape: s32[2], index: 1, kind: input, shape index: {}]   ;;  %s335_s2 = inlined_call_operand.vmem [shape: f32[16,128], index: 2, kind: input, shape index: {}]   ;;  %s336_s3 = inlined_call_operand.vmem [shape: f32[16,128], index: 3, kind: input, shape index: {}]   ;;  %s337_s4 = inlined_call_operand.vmem [shape: f32[1,3,8,128], index: 4, kind: output, shape index: {}]  }
   0x1   :  { %s10_s17 = sshll.u32 %s334_s1, 4  ;;  %s11_s17 = int_to_ptr.vmem [resolvable:$true] %s10_s17 }
   0x2   :  { %s245_s18 = scalar_lea.vmem %s11_s17, 16  ;;  %p250_p1 = scmp.lt.s32.totalorder %s11_s17, %s11_s17 }
   0x3   :  { %p246_p0 = scmp.ne.s32.totalorder %s11_s17, %s245_s18  ;;  %p251_p2 = scmp.lt.s32.totalorder %s245_s18, %s245_s18 }
   0x5   :  { %p252_p3 = por %p251_p2, %p250_p1 }
   0x7   :  { %p253_p4 = pnand %p252_p3, %p246_p0 }
   0x9   :  { %256 = shalt.err (!%p253_p4)  }
   0xa   :  { %s259_s19 = smov [#allocation7]  }
   0xb   :  { %13 = dma.vmem_to_smem %s11_s17, 16, %s259_s19, [#allocation5] }
   0xc   :  { %257 = dma.done.wait [#allocation5], 16 }
   0xd   :  { %258 = vsyncadd [#allocation5], 4294967280 }
   0xe   :  { %15 = sfence }
   0xf   :  { %s219_s20 = sld [smem:[#allocation7 + $0x1]]  ;;  %s291_s21 = sld [smem:[#allocation7]]  ;;  %v260_v0 = vmov 0.0  }
  0x10   :  { %98 = vst [vmem:[#allocation2] sm:$0xff] %v260_v0  ;;  %99 = vst [vmem:[#allocation3] sm:$0xff] %v260_v0 }
  0x11   :  { %100 = vst [vmem:[#allocation4] sm:$0xff] %v260_v0 }
  0x15   :  { %p220_p5 = scmp.gt.s32.totalorder %s219_s20, 0  ;;  %p228_p7 = scmp.lt.s32.totalorder %s291_s21, 16 }
  0x16   :  { %v112_v3 = vstv (!%p228_p7), %s333_s0  ;;  %v261_v6 = vmov (!%p228_p7), 0.0  }
  0x17   :  { %s339_s20 = smov (%p220_p5, %s219_s20), 0  ;;  %109 = sbr.rel (%p228_p7) target bundleno = 41 (0x29), region = 17 }
  0x18   :  { %s221_s1 = sshll.u32 %s339_s20, 1  ;;  %v129_v9 = vld [vmem:[#allocation2] sm:$0xff] (!%p228_p7)  ;;  %v133_v13 = vld [vmem:[#allocation3] sm:$0xff] (!%p228_p7)  ;;  %v137_v18 = vld [vmem:[#allocation4] sm:$0xff] (!%p228_p7) }
  0x19   :  { %p71_p6 = scmp.lt.s32.totalorder %s221_s1, 1 }
  0x1b   :  { %s341_s1 = smov (!%p71_p6, %s221_s1), 1 }
  0x1c   :  { %s222_s22 = sshll.u32 %s341_s1, 3 }
  0x1d   :  { %s296_s25 = scalar_lea.vmem %s335_s2, %s222_s22  ;;  %s301_s28 = scalar_lea.vmem %s336_s3, %s222_s22 }
  0x1e   :  { %v110_v1 = vld [vmem:[%s296_s25] sm:$0xff]  ;;  %v111_v2 = vld [vmem:[%s296_s25 + $0x8] sm:$0xff] }
  0x1f   :  { %vm113_vm0 = vcmp.gt.f32.partialorder %v110_v1, %v112_v3  ;;  %vm114_vm1 = vcmp.gt.f32.partialorder %v111_v2, %v112_v3  ;;  %v119_v4 = vld [vmem:[%s301_s28] sm:$0xff]  ;;  %v120_v5 = vld [vmem:[%s301_s28 + $0x8] sm:$0xff] }
  0x20   :  { %v229_v7 = vsel %vm113_vm0, 1.0, %v261_v6  ;;  %v230_v8 = vsel %vm114_vm1, 1.0, %v261_v6  ;;  %vm121_vm2 = vcmp.gt.f32.partialorder %v119_v4, %v112_v3  ;;  %vm122_vm3 = vcmp.gt.f32.partialorder %v120_v5, %v112_v3 }
  0x21   :  { %v130_v10 = vadd.f32 %v230_v8, %v229_v7  ;;  %v231_v11 = vsel %vm121_vm2, 1.0, %v261_v6  ;;  %v232_v12 = vsel %vm122_vm3, 1.0, %v261_v6 }
  0x22   :  { %v134_v14 = vadd.f32 %v232_v12, %v231_v11  ;;  %v127_v15 = vmul.f32 %v231_v11, %v229_v7  ;;  %v128_v16 = vmul.f32 %v232_v12, %v230_v8 }
  0x23   :  { %v131_v17 = vadd.f32 %v130_v10, %v129_v9 }
  0x24   :  { %v135_v19 = vadd.f32 %v134_v14, %v133_v13  ;;  %v138_v20 = vadd.f32 %v128_v16, %v127_v15 }
  0x25   :  { %132 = vst [vmem:[#allocation2] sm:$0xff] %v131_v17 }
  0x26   :  { %136 = vst [vmem:[#allocation3] sm:$0xff] %v135_v19  ;;  %v139_v21 = vadd.f32 %v138_v20, %v137_v18 }
  0x28   :  { %140 = vst [vmem:[#allocation4] sm:$0xff] %v139_v21 }
  0x29 PF:  { %p233_p8 = scmp.gt.s32.totalorder %s291_s21, 0 }
  0x2b   :  { %p143_p9 = pnand %p233_p8, %p228_p7 }
  0x2c   :  { %v147_v22 = vld [vmem:[%s296_s25] sm:$0xff] (!%p143_p9)  ;;  %v148_v23 = vld [vmem:[%s296_s25 + $0x8] sm:$0xff] (!%p143_p9)  ;;  %v149_v24 = vstv (!%p143_p9), %s333_s0  ;;  %v164_v25 = vlaneseq (!%p143_p9)  ;;  %v171_v26 = vstv (!%p143_p9), %s291_s21  ;;  %v262_v29 = vmov (!%p143_p9), 0.0  }
  0x2d   :  { %146 = sbr.rel (%p143_p9) target bundleno = 59 (0x3b), region = 21  ;;  %vm150_vm4 = vcmp.gt.f32.partialorder (!%p143_p9), %v147_v22, %v149_v24  ;;  %vm151_vm5 = vcmp.gt.f32.partialorder (!%p143_p9), %v148_v23, %v149_v24  ;;  %v156_v27 = vld [vmem:[%s301_s28] sm:$0xff] (!%p143_p9)  ;;  %v157_v28 = vld [vmem:[%s301_s28 + $0x8] sm:$0xff] (!%p143_p9) }
  0x2e   :  { %v235_v30 = vsel (!%p143_p9), %vm150_vm4, 1.0, %v262_v29  ;;  %v165_v31 = vshrl.u32 (!%p143_p9), %v164_v25, 7  ;;  %vm158_vm6 = vcmp.gt.f32.partialorder (!%p143_p9), %v156_v27, %v149_v24  ;;  %vm159_vm7 = vcmp.gt.f32.partialorder (!%p143_p9), %v157_v28, %v149_v24  ;;  %v180_v40 = vld [vmem:[#allocation2] sm:$0xff] (!%p143_p9)  ;;  %v184_v42 = vld [vmem:[#allocation3] sm:$0xff] (!%p143_p9) }
  0x2f   :  { %v237_v32 = vsel (!%p143_p9), %vm158_vm6, 1.0, %v262_v29  ;;  %v236_v33 = vsel (!%p143_p9), %vm151_vm5, 1.0, %v262_v29  ;;  %v238_v35 = vsel (!%p143_p9), %vm159_vm7, 1.0, %v262_v29  ;;  %v188_v46 = vld [vmem:[#allocation4] sm:$0xff] (!%p143_p9) }
  0x30   :  { %v166_v34 = vadd.s32 (!%p143_p9), 8, %v165_v31  ;;  %vm172_vm8 = vcmp.lt.s32.totalorder (!%p143_p9), %v165_v31, %v171_v26 }
  0x31   :  { %v174_v36 = vsel (!%p143_p9), %vm172_vm8, %v235_v30, 0.0  ;;  %v176_v37 = vsel (!%p143_p9), %vm172_vm8, %v237_v32, 0.0 }
  0x32   :  { %vm173_vm9 = vcmp.lt.s32.totalorder (!%p143_p9), %v166_v34, %v171_v26  ;;  %v178_v38 = vmul.f32 (!%p143_p9), %v176_v37, %v174_v36 }
  0x33   :  { %v175_v39 = vsel (!%p143_p9), %vm173_vm9, %v236_v33, 0.0  ;;  %v177_v41 = vsel (!%p143_p9), %vm173_vm9, %v238_v35, 0.0 }
  0x34   :  { %v181_v43 = vadd.f32 %v175_v39, %v174_v36  ;;  %v185_v44 = vadd.f32 %v177_v41, %v176_v37  ;;  %v179_v45 = vmul.f32 %v177_v41, %v175_v39 }
  0x36   :  { %v182_v47 = vadd.f32 %v181_v43, %v180_v40  ;;  %v186_v48 = vadd.f32 %v185_v44, %v184_v42  ;;  %v189_v49 = vadd.f32 %v179_v45, %v178_v38 }
  0x38   :  { %183 = vst [vmem:[#allocation2] sm:$0xff] %v182_v47  ;;  %187 = vst [vmem:[#allocation3] sm:$0xff] %v186_v48  ;;  %v190_v50 = vadd.f32 %v189_v49, %v188_v46 }
  0x3a   :  { %191 = vst [vmem:[#allocation4] sm:$0xff] %v190_v50 }
  0x3b PF:  {}
  0x3f   :  { %v195_v51 = vld [vmem:[#allocation2] sm:$0xff]  ;;  %v197_v52 = vld [vmem:[#allocation3] sm:$0xff] }
  0x40   :  { %196 = vst [vmem:[%s337_s4] sm:$0xff] %v195_v51  ;;  %239 = vst [vmem:[%s337_s4 + $0x8] sm:$0xff] %v197_v52 }
  0x41   :  { %v200_v53 = vld [vmem:[#allocation4] sm:$0xff] }
  0x42   :  { %240 = vst [vmem:[%s337_s4 + $0x10] sm:$0xff] %v200_v53 }

</bundles_post_ra>
